<compile_context>
chip_gen: v6e
topology: v6e:2x2x1
jax: 0.10.0
libtpu: 0.0.40
codegen_flags: <defaults>
</compile_context>

<pallas_src>
import functools

import jax
import jax.numpy as jnp
from jax.experimental import pallas as pl
from jax.experimental.pallas import tpu as pltpu


def _branch_sep_reduction_kernel(xp_ref, tapw_ref, pwb_ref, o_ref, *, Ho, Wo, K, C, Cout):
    # xp_ref:   (4, C, NBLK)     parity-deinterleaved input planes for this block of images:
    #                            xp[2p+q, c, lane] = x[b, c, 2i+p, 2j+q], lane = b*Ho*Wo+i*Wo+j
    # tapw_ref: (2*K*K, C, NBLK) masked depthwise tap weights:
    #                            rows [0,   K*K)  : w1_dw[c,kh,kw] * valid_s2[kh,kw,lane]
    #                            rows [K*K, 2K*K) : w2_dw[c,kh,kw] * valid_s1[kh,kw,lane]
    # pwb_ref:  (C+Cout, C+1)    rows [0,C):       [ w1_pw * bn1_scale | bn1_shift ]
    #                            rows [C,C+Cout):  [ w2_pw * bn2_scale | bn2_shift ]
    # o_ref:    (Cout, NBLK)     lane-dense output block, stored in the model dtype
    f32 = jnp.float32
    NB = o_ref.shape[-1]
    KK = K * K

    # Hoisted parameter load (constant index_map -> resident across grid steps).
    pwb = pwb_ref[...]
    w1p, b1 = pwb[0:C, 0:C], pwb[0:C, C:C + 1]
    w2p, b2 = pwb[C:C + Cout, 0:C], pwb[C:C + Cout, C:C + 1]

    # Fused ReLU on the four parity planes (activations cross HBM in the model dtype).
    planes = [jnp.maximum(xp_ref[k].astype(f32), 0.0) for k in range(4)]

    # ---- separable_1 depthwise: 3x3 / stride 2.  ZeroPad2d + conv-pad + crop collapses to a
    # bottom/right zero pad, realized purely by the masks pre-folded into tapw (1 FMA / tap).
    acc1 = jnp.zeros((C, NB), f32)
    for kh in range(K):
        p, dr = kh % 2, kh // 2
        for kw in range(K):
            q, dc = kw % 2, kw // 2
            src = planes[2 * p + q]
            shift = dr * Wo + dc
            if shift:
                src = pltpu.roll(src, (-shift) % NB, axis=1)   # src[n] <- plane[n + shift]
            acc1 = acc1 + tapw_ref[kh * K + kw] * src

    # ---- pointwise 1x1 (BN scale pre-folded into the weight rows): VPU broadcast-FMA loop
    # for small C, MXU dot only when the contraction is deep enough to pay for fill/drain.
    def pointwise(w, acc, n_out):
        if C >= 64:
            return jnp.dot(w, acc, preferred_element_type=f32)
        out = jnp.zeros((n_out, NB), f32)
        for cin in range(C):
            out = out + w[:, cin:cin + 1] * acc[cin:cin + 1, :]
        return out

    z = jnp.maximum(pointwise(w1p, acc1, C) + b1, 0.0)          # + BN1 shift + ReLU

    # ---- separable_2 depthwise: 3x3 / stride 1 / pad 1 (static lane rolls; masks in tapw).
    acc2 = jnp.zeros((C, NB), f32)
    for kh in range(K):
        for kw in range(K):
            delta = (kh - 1) * Wo + (kw - 1)
            src = z if delta == 0 else pltpu.roll(z, (-delta) % NB, axis=1)
            acc2 = acc2 + tapw_ref[KK + kh * K + kw] * src

    # ---- pointwise 1x1 + BN2 shift; full-lane-width store directly in the model dtype.
    o_ref[...] = (pointwise(w2p, acc2, Cout) + b2).astype(o_ref.dtype)


def branch_separables_reduction(x, w1_dw, w1_pw, g1, be1, m1, v1,
                                w2_dw, w2_pw, g2, be2, m2, v2, *, eps=1e-3):
    """x: (B, C, H, W) NCHW; torch-layout weights; BatchNorm in inference mode."""
    B, C, H, W = x.shape
    K = w1_dw.shape[-1]
    Cout = w2_pw.shape[0]
    assert K == 3 and H % 2 == 0 and W % 2 == 0, "specialized to 3x3 / stride-2 reduction"
    Ho, Wo = H // 2, W // 2
    HoWo = Ho * Wo
    NB = B * HoWo

    # Whole-image grid blocks: >=128 lanes/step when possible (pipelining + megacore); the
    # block lane count is a multiple of Ho*Wo so the edge-mask pattern repeats identically.
    nblk = B
    for d in range(max(1, pl.cdiv(128, HoWo)), B + 1):
        if B % d == 0:
            nblk = d
            break
    NB_blk = nblk * HoWo
    num_blocks = B // nblk

    # One-time even/odd parity deinterleave, kept in the model dtype (no f32 widening of the
    # main activation traffic).  allow_input_fusion lets XLA fuse it into the operand.
    xp = jnp.stack([x[:, :, p::2, q::2] for p in (0, 1) for q in (0, 1)], axis=0)
    xp = jnp.transpose(xp, (0, 2, 1, 3, 4)).reshape(4, C, NB)

    # Per-tap validity masks (identical for every block) folded into the depthwise weights.
    lane = jnp.arange(NB_blk, dtype=jnp.int32)
    row = (lane // Wo) % Ho
    col = lane % Wo
    msk1, msk2 = [], []
    for kh in range(K):
        for kw in range(K):
            dr, dc = kh // 2, kw // 2                 # stride-2 branch: bottom/right zero pad
            msk1.append((row + dr < Ho) & (col + dc < Wo))
            dh, dw = kh - 1, kw - 1                   # stride-1 branch: pad 1 on all sides
            msk2.append((row + dh >= 0) & (row + dh < Ho) &
                        (col + dw >= 0) & (col + dw < Wo))
    msk1 = jnp.stack(msk1).astype(jnp.float32)        # (K*K, NB_blk)
    msk2 = jnp.stack(msk2).astype(jnp.float32)

    def dw_taps(w):                                   # torch (C,1,K,K) -> (K*K, C), tap-major
        return jnp.transpose(w[:, 0].reshape(C, K * K), (1, 0)).astype(jnp.float32)

    tapw = jnp.concatenate(
        [dw_taps(w1_dw)[:, :, None] * msk1[:, None, :],
         dw_taps(w2_dw)[:, :, None] * msk2[:, None, :]], axis=0)       # (2*K*K, C, NB_blk)

    # Fold BN scales into the pointwise weight rows; pack [weights | shift] for both layers.
    s1 = (g1 / jnp.sqrt(v1 + eps)).astype(jnp.float32)
    s2 = (g2 / jnp.sqrt(v2 + eps)).astype(jnp.float32)
    pwb = jnp.concatenate([
        jnp.concatenate([w1_pw[:, :, 0, 0] * s1[:, None], (be1 - m1 * s1)[:, None]], axis=1),
        jnp.concatenate([w2_pw[:, :, 0, 0] * s2[:, None], (be2 - m2 * s2)[:, None]], axis=1),
    ], axis=0).astype(jnp.float32)                                     # (C+Cout, C+1)

    kernel = functools.partial(_branch_sep_reduction_kernel,
                               Ho=Ho, Wo=Wo, K=K, C=C, Cout=Cout)

    out_flat = pl.pallas_call(
        kernel,
        out_shape=jax.ShapeDtypeStruct((Cout, NB), x.dtype),
        grid_spec=pltpu.PrefetchScalarGridSpec(
            num_scalar_prefetch=0,
            grid=(num_blocks,),
            in_specs=[
                pl.BlockSpec((4, C, NB_blk), lambda i: (0, 0, i)),
                pl.BlockSpec((2 * K * K, C, NB_blk), lambda i: (0, 0, 0)),   # resident
                pl.BlockSpec((C + Cout, C + 1), lambda i: (0, 0)),           # resident
            ],
            out_specs=pl.BlockSpec((Cout, NB_blk), lambda i: (0, i)),
        ),
        compiler_params=pltpu.CompilerParams(
            dimension_semantics=("parallel",),
            vmem_limit_bytes=8 * 1024 * 1024,        # actual VMEM need is well under 1 MiB
            allow_input_fusion=[True, True, True],
        ),
    )(xp, tapw, pwb)

    # (Cout, B*Ho*Wo) -> (B, Cout, Ho, Wo)  (tiny wrapper-side rearrange)
    return jnp.transpose(out_flat.reshape(Cout, B, Ho, Wo), (1, 0, 2, 3))


def _reference(x, w1_dw, w1_pw, g1, be1, m1, v1, w2_dw, w2_pw, g2, be2, m2, v2, *, eps=1e-3):
    """Pure-JAX replica of the PyTorch BranchSeparablesReduction forward (BN eval mode)."""
    def dw(y, w, stride, pad):
        return jax.lax.conv_general_dilated(
            y, w, window_strides=(stride, stride), padding=((pad, pad), (pad, pad)),
            dimension_numbers=("NCHW", "OIHW", "NCHW"), feature_group_count=y.shape[1])

    def pw(y, w):
        return jax.lax.conv_general_dilated(
            y, w, window_strides=(1, 1), padding="VALID",
            dimension_numbers=("NCHW", "OIHW", "NCHW"))

    def bn(y, g, b, m, v):
        return ((y - m[None, :, None, None]) / jnp.sqrt(v[None, :, None, None] + eps)
                * g[None, :, None, None] + b[None, :, None, None])

    y = jnp.maximum(x, 0.0)
    y = jnp.pad(y, ((0, 0), (0, 0), (1, 0), (1, 0)))          # ZeroPad2d((1,0,1,0))
    y = pw(dw(y, w1_dw, 2, 1), w1_pw)
    y = y[:, :, 1:, 1:]
    y = jnp.maximum(bn(y, g1, be1, m1, v1), 0.0)
    y = pw(dw(y, w2_dw, 1, 1), w2_pw)
    return bn(y, g2, be2, m2, v2)


if __name__ == "__main__":
    B, C_in, C_out, H, W = 4, 8, 16, 16, 16
    K, EPS = 3, 1e-3

    keys = jax.random.split(jax.random.PRNGKey(0), 13)
    x     = jax.random.normal(keys[0], (B, C_in, H, W), jnp.float32)
    w1_dw = jax.random.normal(keys[1], (C_in, 1, K, K), jnp.float32) * 0.2
    w1_pw = jax.random.normal(keys[2], (C_in, C_in, 1, 1), jnp.float32) * 0.2
    g1    = 1.0 + 0.1 * jax.random.normal(keys[3], (C_in,), jnp.float32)
    be1   = 0.1 * jax.random.normal(keys[4], (C_in,), jnp.float32)
    m1    = 0.1 * jax.random.normal(keys[5], (C_in,), jnp.float32)
    v1    = 0.5 + jax.random.uniform(keys[6], (C_in,), jnp.float32)
    w2_dw = jax.random.normal(keys[7], (C_in, 1, K, K), jnp.float32) * 0.2
    w2_pw = jax.random.normal(keys[8], (C_out, C_in, 1, 1), jnp.float32) * 0.2
    g2    = 1.0 + 0.1 * jax.random.normal(keys[9], (C_out,), jnp.float32)
    be2   = 0.1 * jax.random.normal(keys[10], (C_out,), jnp.float32)
    m2    = 0.1 * jax.random.normal(keys[11], (C_out,), jnp.float32)
    v2    = 0.5 + jax.random.uniform(keys[12], (C_out,), jnp.float32)

    args = (x, w1_dw, w1_pw, g1, be1, m1, v1, w2_dw, w2_pw, g2, be2, m2, v2)

    out = jax.jit(functools.partial(branch_separables_reduction, eps=EPS))(*args)
    out = jax.block_until_ready(out)

    ref = jax.block_until_ready(_reference(*args, eps=EPS))
    assert out.shape == (B, C_out, H // 2, W // 2), out.shape
    max_err = float(jnp.max(jnp.abs(out - ref)))
    assert jnp.allclose(out, ref, atol=1e-4, rtol=1e-4), max_err

    print("KERNEL_OK")
</pallas_src>

<mosaic_0001>
module attributes {stable_mosaic.version = 11 : i64} {
  func.func @_branch_sep_reduction_kernel(%arg0: i32, %arg1: memref<4x8x128xf32, #tpu.memory_space<vmem>>, %arg2: memref<18x8x128xf32, #tpu.memory_space<vmem>>, %arg3: memref<24x9xf32, #tpu.memory_space<vmem>>, %arg4: memref<16x128xf32, #tpu.memory_space<vmem>>) attributes {dimension_semantics = [#tpu.dimension_semantics<parallel>], iteration_bounds = array<i64: 2>, scalar_prefetch = 0 : i64, scratch_operands = 0 : i64, tpu.core_type = #tpu.core_type<tc>, window_params = [{transform_indices = @transform_0, window_bounds = array<i64: 4, 8, 128>}, {pipeline_mode = #tpu.pipeline_mode<synchronous>, transform_indices = @transform_1, window_bounds = array<i64: 18, 8, 128>}, {pipeline_mode = #tpu.pipeline_mode<synchronous>, transform_indices = @transform_2, window_bounds = array<i64: 24, 9>}, {transform_indices = @transform_3, window_bounds = array<i64: 16, 128>}]} {
    %c0 = arith.constant 0 : index
    %c0_0 = arith.constant 0 : index
    %0 = vector.load %arg3[%c0, %c0_0] : memref<24x9xf32, #tpu.memory_space<vmem>>, vector<24x9xf32>
    %1 = vector.extract_strided_slice %0 {offsets = [0, 0], sizes = [8, 8], strides = [1, 1]} : vector<24x9xf32> to vector<8x8xf32>
    %2 = vector.extract_strided_slice %0 {offsets = [0, 8], sizes = [8, 1], strides = [1, 1]} : vector<24x9xf32> to vector<8x1xf32>
    %3 = vector.extract_strided_slice %0 {offsets = [8, 0], sizes = [16, 8], strides = [1, 1]} : vector<24x9xf32> to vector<16x8xf32>
    %4 = vector.extract_strided_slice %0 {offsets = [8, 8], sizes = [16, 1], strides = [1, 1]} : vector<24x9xf32> to vector<16x1xf32>
    %c0_1 = arith.constant 0 : index
    %c0_2 = arith.constant 0 : index
    %c0_3 = arith.constant 0 : index
    %5 = vector.load %arg1[%c0_1, %c0_2, %c0_3] : memref<4x8x128xf32, #tpu.memory_space<vmem>>, vector<1x8x128xf32>
    %6 = vector.shape_cast %5 : vector<1x8x128xf32> to vector<8x128xf32>
    %cst = arith.constant 0.000000e+00 : f32
    %7 = vector.broadcast %cst : f32 to vector<8x128xf32>
    %8 = arith.maximumf %6, %7 : vector<8x128xf32>
    %c1 = arith.constant 1 : index
    %c0_4 = arith.constant 0 : index
    %c0_5 = arith.constant 0 : index
    %9 = vector.load %arg1[%c1, %c0_4, %c0_5] : memref<4x8x128xf32, #tpu.memory_space<vmem>>, vector<1x8x128xf32>
    %10 = vector.shape_cast %9 : vector<1x8x128xf32> to vector<8x128xf32>
    %cst_6 = arith.constant 0.000000e+00 : f32
    %11 = vector.broadcast %cst_6 : f32 to vector<8x128xf32>
    %12 = arith.maximumf %10, %11 : vector<8x128xf32>
    %c2 = arith.constant 2 : index
    %c0_7 = arith.constant 0 : index
    %c0_8 = arith.constant 0 : index
    %13 = vector.load %arg1[%c2, %c0_7, %c0_8] : memref<4x8x128xf32, #tpu.memory_space<vmem>>, vector<1x8x128xf32>
    %14 = vector.shape_cast %13 : vector<1x8x128xf32> to vector<8x128xf32>
    %cst_9 = arith.constant 0.000000e+00 : f32
    %15 = vector.broadcast %cst_9 : f32 to vector<8x128xf32>
    %16 = arith.maximumf %14, %15 : vector<8x128xf32>
    %c3 = arith.constant 3 : index
    %c0_10 = arith.constant 0 : index
    %c0_11 = arith.constant 0 : index
    %17 = vector.load %arg1[%c3, %c0_10, %c0_11] : memref<4x8x128xf32, #tpu.memory_space<vmem>>, vector<1x8x128xf32>
    %18 = vector.shape_cast %17 : vector<1x8x128xf32> to vector<8x128xf32>
    %cst_12 = arith.constant 0.000000e+00 : f32
    %19 = vector.broadcast %cst_12 : f32 to vector<8x128xf32>
    %20 = arith.maximumf %18, %19 : vector<8x128xf32>
    %cst_13 = arith.constant 0.000000e+00 : f32
    %21 = vector.broadcast %cst_13 : f32 to vector<8x128xf32>
    %c0_14 = arith.constant 0 : index
    %c0_15 = arith.constant 0 : index
    %c0_16 = arith.constant 0 : index
    %22 = vector.load %arg2[%c0_14, %c0_15, %c0_16] : memref<18x8x128xf32, #tpu.memory_space<vmem>>, vector<1x8x128xf32>
    %23 = vector.shape_cast %22 : vector<1x8x128xf32> to vector<8x128xf32>
    %24 = arith.mulf %23, %8 : vector<8x128xf32>
    %25 = arith.addf %21, %24 : vector<8x128xf32>
    %c1_17 = arith.constant 1 : index
    %c0_18 = arith.constant 0 : index
    %c0_19 = arith.constant 0 : index
    %26 = vector.load %arg2[%c1_17, %c0_18, %c0_19] : memref<18x8x128xf32, #tpu.memory_space<vmem>>, vector<1x8x128xf32>
    %27 = vector.shape_cast %26 : vector<1x8x128xf32> to vector<8x128xf32>
    %28 = arith.mulf %27, %12 : vector<8x128xf32>
    %29 = arith.addf %25, %28 : vector<8x128xf32>
    %c127_i32 = arith.constant 127 : i32
    %30 = tpu.dynamic_rotate %8 by %c127_i32 dim 1 : vector<8x128xf32>, i32 -> vector<8x128xf32>
    %c2_20 = arith.constant 2 : index
    %c0_21 = arith.constant 0 : index
    %c0_22 = arith.constant 0 : index
    %31 = vector.load %arg2[%c2_20, %c0_21, %c0_22] : memref<18x8x128xf32, #tpu.memory_space<vmem>>, vector<1x8x128xf32>
    %32 = vector.shape_cast %31 : vector<1x8x128xf32> to vector<8x128xf32>
    %33 = arith.mulf %32, %30 : vector<8x128xf32>
    %34 = arith.addf %29, %33 : vector<8x128xf32>
    %c3_23 = arith.constant 3 : index
    %c0_24 = arith.constant 0 : index
    %c0_25 = arith.constant 0 : index
    %35 = vector.load %arg2[%c3_23, %c0_24, %c0_25] : memref<18x8x128xf32, #tpu.memory_space<vmem>>, vector<1x8x128xf32>
    %36 = vector.shape_cast %35 : vector<1x8x128xf32> to vector<8x128xf32>
    %37 = arith.mulf %36, %16 : vector<8x128xf32>
    %38 = arith.addf %34, %37 : vector<8x128xf32>
    %c4 = arith.constant 4 : index
    %c0_26 = arith.constant 0 : index
    %c0_27 = arith.constant 0 : index
    %39 = vector.load %arg2[%c4, %c0_26, %c0_27] : memref<18x8x128xf32, #tpu.memory_space<vmem>>, vector<1x8x128xf32>
    %40 = vector.shape_cast %39 : vector<1x8x128xf32> to vector<8x128xf32>
    %41 = arith.mulf %40, %20 : vector<8x128xf32>
    %42 = arith.addf %38, %41 : vector<8x128xf32>
    %c127_i32_28 = arith.constant 127 : i32
    %43 = tpu.dynamic_rotate %16 by %c127_i32_28 dim 1 : vector<8x128xf32>, i32 -> vector<8x128xf32>
    %c5 = arith.constant 5 : index
    %c0_29 = arith.constant 0 : index
    %c0_30 = arith.constant 0 : index
    %44 = vector.load %arg2[%c5, %c0_29, %c0_30] : memref<18x8x128xf32, #tpu.memory_space<vmem>>, vector<1x8x128xf32>
    %45 = vector.shape_cast %44 : vector<1x8x128xf32> to vector<8x128xf32>
    %46 = arith.mulf %45, %43 : vector<8x128xf32>
    %47 = arith.addf %42, %46 : vector<8x128xf32>
    %c120_i32 = arith.constant 120 : i32
    %48 = tpu.dynamic_rotate %8 by %c120_i32 dim 1 : vector<8x128xf32>, i32 -> vector<8x128xf32>
    %c6 = arith.constant 6 : index
    %c0_31 = arith.constant 0 : index
    %c0_32 = arith.constant 0 : index
    %49 = vector.load %arg2[%c6, %c0_31, %c0_32] : memref<18x8x128xf32, #tpu.memory_space<vmem>>, vector<1x8x128xf32>
    %50 = vector.shape_cast %49 : vector<1x8x128xf32> to vector<8x128xf32>
    %51 = arith.mulf %50, %48 : vector<8x128xf32>
    %52 = arith.addf %47, %51 : vector<8x128xf32>
    %c120_i32_33 = arith.constant 120 : i32
    %53 = tpu.dynamic_rotate %12 by %c120_i32_33 dim 1 : vector<8x128xf32>, i32 -> vector<8x128xf32>
    %c7 = arith.constant 7 : index
    %c0_34 = arith.constant 0 : index
    %c0_35 = arith.constant 0 : index
    %54 = vector.load %arg2[%c7, %c0_34, %c0_35] : memref<18x8x128xf32, #tpu.memory_space<vmem>>, vector<1x8x128xf32>
    %55 = vector.shape_cast %54 : vector<1x8x128xf32> to vector<8x128xf32>
    %56 = arith.mulf %55, %53 : vector<8x128xf32>
    %57 = arith.addf %52, %56 : vector<8x128xf32>
    %c119_i32 = arith.constant 119 : i32
    %58 = tpu.dynamic_rotate %8 by %c119_i32 dim 1 : vector<8x128xf32>, i32 -> vector<8x128xf32>
    %c8 = arith.constant 8 : index
    %c0_36 = arith.constant 0 : index
    %c0_37 = arith.constant 0 : index
    %59 = vector.load %arg2[%c8, %c0_36, %c0_37] : memref<18x8x128xf32, #tpu.memory_space<vmem>>, vector<1x8x128xf32>
    %60 = vector.shape_cast %59 : vector<1x8x128xf32> to vector<8x128xf32>
    %61 = arith.mulf %60, %58 : vector<8x128xf32>
    %62 = arith.addf %57, %61 : vector<8x128xf32>
    %cst_38 = arith.constant 0.000000e+00 : f32
    %63 = vector.broadcast %cst_38 : f32 to vector<8x128xf32>
    %64 = vector.extract_strided_slice %1 {offsets = [0, 0], sizes = [8, 1], strides = [1, 1]} : vector<8x8xf32> to vector<8x1xf32>
    %65 = vector.extract_strided_slice %62 {offsets = [0, 0], sizes = [1, 128], strides = [1, 1]} : vector<8x128xf32> to vector<1x128xf32>
    %66 = vector.broadcast %64 : vector<8x1xf32> to vector<8x128xf32>
    %67 = vector.broadcast %65 : vector<1x128xf32> to vector<8x128xf32>
    %68 = arith.mulf %66, %67 : vector<8x128xf32>
    %69 = arith.addf %63, %68 : vector<8x128xf32>
    %70 = vector.extract_strided_slice %1 {offsets = [0, 1], sizes = [8, 1], strides = [1, 1]} : vector<8x8xf32> to vector<8x1xf32>
    %71 = vector.extract_strided_slice %62 {offsets = [1, 0], sizes = [1, 128], strides = [1, 1]} : vector<8x128xf32> to vector<1x128xf32>
    %72 = vector.broadcast %70 : vector<8x1xf32> to vector<8x128xf32>
    %73 = vector.broadcast %71 : vector<1x128xf32> to vector<8x128xf32>
    %74 = arith.mulf %72, %73 : vector<8x128xf32>
    %75 = arith.addf %69, %74 : vector<8x128xf32>
    %76 = vector.extract_strided_slice %1 {offsets = [0, 2], sizes = [8, 1], strides = [1, 1]} : vector<8x8xf32> to vector<8x1xf32>
    %77 = vector.extract_strided_slice %62 {offsets = [2, 0], sizes = [1, 128], strides = [1, 1]} : vector<8x128xf32> to vector<1x128xf32>
    %78 = vector.broadcast %76 : vector<8x1xf32> to vector<8x128xf32>
    %79 = vector.broadcast %77 : vector<1x128xf32> to vector<8x128xf32>
    %80 = arith.mulf %78, %79 : vector<8x128xf32>
    %81 = arith.addf %75, %80 : vector<8x128xf32>
    %82 = vector.extract_strided_slice %1 {offsets = [0, 3], sizes = [8, 1], strides = [1, 1]} : vector<8x8xf32> to vector<8x1xf32>
    %83 = vector.extract_strided_slice %62 {offsets = [3, 0], sizes = [1, 128], strides = [1, 1]} : vector<8x128xf32> to vector<1x128xf32>
    %84 = vector.broadcast %82 : vector<8x1xf32> to vector<8x128xf32>
    %85 = vector.broadcast %83 : vector<1x128xf32> to vector<8x128xf32>
    %86 = arith.mulf %84, %85 : vector<8x128xf32>
    %87 = arith.addf %81, %86 : vector<8x128xf32>
    %88 = vector.extract_strided_slice %1 {offsets = [0, 4], sizes = [8, 1], strides = [1, 1]} : vector<8x8xf32> to vector<8x1xf32>
    %89 = vector.extract_strided_slice %62 {offsets = [4, 0], sizes = [1, 128], strides = [1, 1]} : vector<8x128xf32> to vector<1x128xf32>
    %90 = vector.broadcast %88 : vector<8x1xf32> to vector<8x128xf32>
    %91 = vector.broadcast %89 : vector<1x128xf32> to vector<8x128xf32>
    %92 = arith.mulf %90, %91 : vector<8x128xf32>
    %93 = arith.addf %87, %92 : vector<8x128xf32>
    %94 = vector.extract_strided_slice %1 {offsets = [0, 5], sizes = [8, 1], strides = [1, 1]} : vector<8x8xf32> to vector<8x1xf32>
    %95 = vector.extract_strided_slice %62 {offsets = [5, 0], sizes = [1, 128], strides = [1, 1]} : vector<8x128xf32> to vector<1x128xf32>
    %96 = vector.broadcast %94 : vector<8x1xf32> to vector<8x128xf32>
    %97 = vector.broadcast %95 : vector<1x128xf32> to vector<8x128xf32>
    %98 = arith.mulf %96, %97 : vector<8x128xf32>
    %99 = arith.addf %93, %98 : vector<8x128xf32>
    %100 = vector.extract_strided_slice %1 {offsets = [0, 6], sizes = [8, 1], strides = [1, 1]} : vector<8x8xf32> to vector<8x1xf32>
    %101 = vector.extract_strided_slice %62 {offsets = [6, 0], sizes = [1, 128], strides = [1, 1]} : vector<8x128xf32> to vector<1x128xf32>
    %102 = vector.broadcast %100 : vector<8x1xf32> to vector<8x128xf32>
    %103 = vector.broadcast %101 : vector<1x128xf32> to vector<8x128xf32>
    %104 = arith.mulf %102, %103 : vector<8x128xf32>
    %105 = arith.addf %99, %104 : vector<8x128xf32>
    %106 = vector.extract_strided_slice %1 {offsets = [0, 7], sizes = [8, 1], strides = [1, 1]} : vector<8x8xf32> to vector<8x1xf32>
    %107 = vector.extract_strided_slice %62 {offsets = [7, 0], sizes = [1, 128], strides = [1, 1]} : vector<8x128xf32> to vector<1x128xf32>
    %108 = vector.broadcast %106 : vector<8x1xf32> to vector<8x128xf32>
    %109 = vector.broadcast %107 : vector<1x128xf32> to vector<8x128xf32>
    %110 = arith.mulf %108, %109 : vector<8x128xf32>
    %111 = arith.addf %105, %110 : vector<8x128xf32>
    %112 = vector.broadcast %2 : vector<8x1xf32> to vector<8x128xf32>
    %113 = arith.addf %111, %112 : vector<8x128xf32>
    %cst_39 = arith.constant 0.000000e+00 : f32
    %114 = vector.broadcast %cst_39 : f32 to vector<8x128xf32>
    %115 = arith.maximumf %113, %114 : vector<8x128xf32>
    %cst_40 = arith.constant 0.000000e+00 : f32
    %116 = vector.broadcast %cst_40 : f32 to vector<8x128xf32>
    %c9_i32 = arith.constant 9 : i32
    %117 = tpu.dynamic_rotate %115 by %c9_i32 dim 1 : vector<8x128xf32>, i32 -> vector<8x128xf32>
    %c9 = arith.constant 9 : index
    %c0_41 = arith.constant 0 : index
    %c0_42 = arith.constant 0 : index
    %118 = vector.load %arg2[%c9, %c0_41, %c0_42] : memref<18x8x128xf32, #tpu.memory_space<vmem>>, vector<1x8x128xf32>
    %119 = vector.shape_cast %118 : vector<1x8x128xf32> to vector<8x128xf32>
    %120 = arith.mulf %119, %117 : vector<8x128xf32>
    %121 = arith.addf %116, %120 : vector<8x128xf32>
    %c8_i32 = arith.constant 8 : i32
    %122 = tpu.dynamic_rotate %115 by %c8_i32 dim 1 : vector<8x128xf32>, i32 -> vector<8x128xf32>
    %c10 = arith.constant 10 : index
    %c0_43 = arith.constant 0 : index
    %c0_44 = arith.constant 0 : index
    %123 = vector.load %arg2[%c10, %c0_43, %c0_44] : memref<18x8x128xf32, #tpu.memory_space<vmem>>, vector<1x8x128xf32>
    %124 = vector.shape_cast %123 : vector<1x8x128xf32> to vector<8x128xf32>
    %125 = arith.mulf %124, %122 : vector<8x128xf32>
    %126 = arith.addf %121, %125 : vector<8x128xf32>
    %c7_i32 = arith.constant 7 : i32
    %127 = tpu.dynamic_rotate %115 by %c7_i32 dim 1 : vector<8x128xf32>, i32 -> vector<8x128xf32>
    %c11 = arith.constant 11 : index
    %c0_45 = arith.constant 0 : index
    %c0_46 = arith.constant 0 : index
    %128 = vector.load %arg2[%c11, %c0_45, %c0_46] : memref<18x8x128xf32, #tpu.memory_space<vmem>>, vector<1x8x128xf32>
    %129 = vector.shape_cast %128 : vector<1x8x128xf32> to vector<8x128xf32>
    %130 = arith.mulf %129, %127 : vector<8x128xf32>
    %131 = arith.addf %126, %130 : vector<8x128xf32>
    %c1_i32 = arith.constant 1 : i32
    %132 = tpu.dynamic_rotate %115 by %c1_i32 dim 1 : vector<8x128xf32>, i32 -> vector<8x128xf32>
    %c12 = arith.constant 12 : index
    %c0_47 = arith.constant 0 : index
    %c0_48 = arith.constant 0 : index
    %133 = vector.load %arg2[%c12, %c0_47, %c0_48] : memref<18x8x128xf32, #tpu.memory_space<vmem>>, vector<1x8x128xf32>
    %134 = vector.shape_cast %133 : vector<1x8x128xf32> to vector<8x128xf32>
    %135 = arith.mulf %134, %132 : vector<8x128xf32>
    %136 = arith.addf %131, %135 : vector<8x128xf32>
    %c13 = arith.constant 13 : index
    %c0_49 = arith.constant 0 : index
    %c0_50 = arith.constant 0 : index
    %137 = vector.load %arg2[%c13, %c0_49, %c0_50] : memref<18x8x128xf32, #tpu.memory_space<vmem>>, vector<1x8x128xf32>
    %138 = vector.shape_cast %137 : vector<1x8x128xf32> to vector<8x128xf32>
    %139 = arith.mulf %138, %115 : vector<8x128xf32>
    %140 = arith.addf %136, %139 : vector<8x128xf32>
    %c127_i32_51 = arith.constant 127 : i32
    %141 = tpu.dynamic_rotate %115 by %c127_i32_51 dim 1 : vector<8x128xf32>, i32 -> vector<8x128xf32>
    %c14 = arith.constant 14 : index
    %c0_52 = arith.constant 0 : index
    %c0_53 = arith.constant 0 : index
    %142 = vector.load %arg2[%c14, %c0_52, %c0_53] : memref<18x8x128xf32, #tpu.memory_space<vmem>>, vector<1x8x128xf32>
    %143 = vector.shape_cast %142 : vector<1x8x128xf32> to vector<8x128xf32>
    %144 = arith.mulf %143, %141 : vector<8x128xf32>
    %145 = arith.addf %140, %144 : vector<8x128xf32>
    %c121_i32 = arith.constant 121 : i32
    %146 = tpu.dynamic_rotate %115 by %c121_i32 dim 1 : vector<8x128xf32>, i32 -> vector<8x128xf32>
    %c15 = arith.constant 15 : index
    %c0_54 = arith.constant 0 : index
    %c0_55 = arith.constant 0 : index
    %147 = vector.load %arg2[%c15, %c0_54, %c0_55] : memref<18x8x128xf32, #tpu.memory_space<vmem>>, vector<1x8x128xf32>
    %148 = vector.shape_cast %147 : vector<1x8x128xf32> to vector<8x128xf32>
    %149 = arith.mulf %148, %146 : vector<8x128xf32>
    %150 = arith.addf %145, %149 : vector<8x128xf32>
    %c120_i32_56 = arith.constant 120 : i32
    %151 = tpu.dynamic_rotate %115 by %c120_i32_56 dim 1 : vector<8x128xf32>, i32 -> vector<8x128xf32>
    %c16 = arith.constant 16 : index
    %c0_57 = arith.constant 0 : index
    %c0_58 = arith.constant 0 : index
    %152 = vector.load %arg2[%c16, %c0_57, %c0_58] : memref<18x8x128xf32, #tpu.memory_space<vmem>>, vector<1x8x128xf32>
    %153 = vector.shape_cast %152 : vector<1x8x128xf32> to vector<8x128xf32>
    %154 = arith.mulf %153, %151 : vector<8x128xf32>
    %155 = arith.addf %150, %154 : vector<8x128xf32>
    %c119_i32_59 = arith.constant 119 : i32
    %156 = tpu.dynamic_rotate %115 by %c119_i32_59 dim 1 : vector<8x128xf32>, i32 -> vector<8x128xf32>
    %c17 = arith.constant 17 : index
    %c0_60 = arith.constant 0 : index
    %c0_61 = arith.constant 0 : index
    %157 = vector.load %arg2[%c17, %c0_60, %c0_61] : memref<18x8x128xf32, #tpu.memory_space<vmem>>, vector<1x8x128xf32>
    %158 = vector.shape_cast %157 : vector<1x8x128xf32> to vector<8x128xf32>
    %159 = arith.mulf %158, %156 : vector<8x128xf32>
    %160 = arith.addf %155, %159 : vector<8x128xf32>
    %cst_62 = arith.constant 0.000000e+00 : f32
    %161 = vector.broadcast %cst_62 : f32 to vector<16x128xf32>
    %162 = vector.extract_strided_slice %3 {offsets = [0, 0], sizes = [16, 1], strides = [1, 1]} : vector<16x8xf32> to vector<16x1xf32>
    %163 = vector.extract_strided_slice %160 {offsets = [0, 0], sizes = [1, 128], strides = [1, 1]} : vector<8x128xf32> to vector<1x128xf32>
    %164 = vector.broadcast %162 : vector<16x1xf32> to vector<16x128xf32>
    %165 = vector.broadcast %163 : vector<1x128xf32> to vector<16x128xf32>
    %166 = arith.mulf %164, %165 : vector<16x128xf32>
    %167 = arith.addf %161, %166 : vector<16x128xf32>
    %168 = vector.extract_strided_slice %3 {offsets = [0, 1], sizes = [16, 1], strides = [1, 1]} : vector<16x8xf32> to vector<16x1xf32>
    %169 = vector.extract_strided_slice %160 {offsets = [1, 0], sizes = [1, 128], strides = [1, 1]} : vector<8x128xf32> to vector<1x128xf32>
    %170 = vector.broadcast %168 : vector<16x1xf32> to vector<16x128xf32>
    %171 = vector.broadcast %169 : vector<1x128xf32> to vector<16x128xf32>
    %172 = arith.mulf %170, %171 : vector<16x128xf32>
    %173 = arith.addf %167, %172 : vector<16x128xf32>
    %174 = vector.extract_strided_slice %3 {offsets = [0, 2], sizes = [16, 1], strides = [1, 1]} : vector<16x8xf32> to vector<16x1xf32>
    %175 = vector.extract_strided_slice %160 {offsets = [2, 0], sizes = [1, 128], strides = [1, 1]} : vector<8x128xf32> to vector<1x128xf32>
    %176 = vector.broadcast %174 : vector<16x1xf32> to vector<16x128xf32>
    %177 = vector.broadcast %175 : vector<1x128xf32> to vector<16x128xf32>
    %178 = arith.mulf %176, %177 : vector<16x128xf32>
    %179 = arith.addf %173, %178 : vector<16x128xf32>
    %180 = vector.extract_strided_slice %3 {offsets = [0, 3], sizes = [16, 1], strides = [1, 1]} : vector<16x8xf32> to vector<16x1xf32>
    %181 = vector.extract_strided_slice %160 {offsets = [3, 0], sizes = [1, 128], strides = [1, 1]} : vector<8x128xf32> to vector<1x128xf32>
    %182 = vector.broadcast %180 : vector<16x1xf32> to vector<16x128xf32>
    %183 = vector.broadcast %181 : vector<1x128xf32> to vector<16x128xf32>
    %184 = arith.mulf %182, %183 : vector<16x128xf32>
    %185 = arith.addf %179, %184 : vector<16x128xf32>
    %186 = vector.extract_strided_slice %3 {offsets = [0, 4], sizes = [16, 1], strides = [1, 1]} : vector<16x8xf32> to vector<16x1xf32>
    %187 = vector.extract_strided_slice %160 {offsets = [4, 0], sizes = [1, 128], strides = [1, 1]} : vector<8x128xf32> to vector<1x128xf32>
    %188 = vector.broadcast %186 : vector<16x1xf32> to vector<16x128xf32>
    %189 = vector.broadcast %187 : vector<1x128xf32> to vector<16x128xf32>
    %190 = arith.mulf %188, %189 : vector<16x128xf32>
    %191 = arith.addf %185, %190 : vector<16x128xf32>
    %192 = vector.extract_strided_slice %3 {offsets = [0, 5], sizes = [16, 1], strides = [1, 1]} : vector<16x8xf32> to vector<16x1xf32>
    %193 = vector.extract_strided_slice %160 {offsets = [5, 0], sizes = [1, 128], strides = [1, 1]} : vector<8x128xf32> to vector<1x128xf32>
    %194 = vector.broadcast %192 : vector<16x1xf32> to vector<16x128xf32>
    %195 = vector.broadcast %193 : vector<1x128xf32> to vector<16x128xf32>
    %196 = arith.mulf %194, %195 : vector<16x128xf32>
    %197 = arith.addf %191, %196 : vector<16x128xf32>
    %198 = vector.extract_strided_slice %3 {offsets = [0, 6], sizes = [16, 1], strides = [1, 1]} : vector<16x8xf32> to vector<16x1xf32>
    %199 = vector.extract_strided_slice %160 {offsets = [6, 0], sizes = [1, 128], strides = [1, 1]} : vector<8x128xf32> to vector<1x128xf32>
    %200 = vector.broadcast %198 : vector<16x1xf32> to vector<16x128xf32>
    %201 = vector.broadcast %199 : vector<1x128xf32> to vector<16x128xf32>
    %202 = arith.mulf %200, %201 : vector<16x128xf32>
    %203 = arith.addf %197, %202 : vector<16x128xf32>
    %204 = vector.extract_strided_slice %3 {offsets = [0, 7], sizes = [16, 1], strides = [1, 1]} : vector<16x8xf32> to vector<16x1xf32>
    %205 = vector.extract_strided_slice %160 {offsets = [7, 0], sizes = [1, 128], strides = [1, 1]} : vector<8x128xf32> to vector<1x128xf32>
    %206 = vector.broadcast %204 : vector<16x1xf32> to vector<16x128xf32>
    %207 = vector.broadcast %205 : vector<1x128xf32> to vector<16x128xf32>
    %208 = arith.mulf %206, %207 : vector<16x128xf32>
    %209 = arith.addf %203, %208 : vector<16x128xf32>
    %210 = vector.broadcast %4 : vector<16x1xf32> to vector<16x128xf32>
    %211 = arith.addf %209, %210 : vector<16x128xf32>
    %c0_63 = arith.constant 0 : index
    %c0_64 = arith.constant 0 : index
    %212 = vector.load %arg4[%c0_63, %c0_64] : memref<16x128xf32, #tpu.memory_space<vmem>>, vector<16x128xf32>
    tpu.vector_store %arg4[%c0_63, %c0_64], %211 {strides = array<i32>} : memref<16x128xf32, #tpu.memory_space<vmem>>, vector<16x128xf32>,
    return
  }
  func.func @transform_0(%arg0: i32) -> (i32, i32, i32) {
    %c0_i32 = arith.constant 0 : i32
    %c0_i32_0 = arith.constant 0 : i32
    %c0_i32_1 = arith.constant 0 : i32
    return %c0_i32, %c0_i32_0, %arg0 : i32, i32, i32
  }
  func.func @transform_1(%arg0: i32) -> (i32, i32, i32) {
    %c0_i32 = arith.constant 0 : i32
    %c0_i32_0 = arith.constant 0 : i32
    %c0_i32_1 = arith.constant 0 : i32
    %c0_i32_2 = arith.constant 0 : i32
    return %c0_i32, %c0_i32_0, %c0_i32_1 : i32, i32, i32
  }
  func.func @transform_2(%arg0: i32) -> (i32, i32) {
    %c0_i32 = arith.constant 0 : i32
    %c0_i32_0 = arith.constant 0 : i32
    %c0_i32_1 = arith.constant 0 : i32
    return %c0_i32, %c0_i32_0 : i32, i32
  }
  func.func @transform_3(%arg0: i32) -> (i32, i32) {
    %c0_i32 = arith.constant 0 : i32
    %c0_i32_0 = arith.constant 0 : i32
    return %c0_i32, %arg0 : i32, i32
  }
}

</mosaic_0001>

<bundles_post_ra>
// kernel: squeeze.5
= control target key start
LH: loop header
LB: loop body
LE: loop exit
PB: predicated region body
PF: predicated region fallthrough
CT: control target
= control target key end

     0   :  { %vm17_vm0 = vcmask 64512   ;;  %s62_s0 = inlined_call_operand.vmem [shape: f32[8,3,3], index: 0, kind: input, shape index: {}]   ;;  %s63_s1 = inlined_call_operand.vmem [shape: f32[8,9], index: 1, kind: output, shape index: {}]  }
   0x1   :  { %v30_v0 = vld [vmem:[%s62_s0 + $0x8] sm:$0xf]  ;;  %v31_v1 = vld [vmem:[%s62_s0 + $0x4] sm:$0xf]  ;;  %v14_v2 = vld [vmem:[%s62_s0] sm:$0xf] }
   0x2   :  { %9 = vst [vmem:[#allocation0] sm:$0xf] %v30_v0  ;;  %13 = vst [vmem:[#allocation0 + $0x10] sm:$0xf] %v31_v1 }
   0x3   :  { %15 = vst [vmem:[#allocation0 + $0x8] sm:$0xf] %v14_v2 }
   0x9   :  { %v20_v4 = vld [vmem:[#allocation0 + $0x10] sm:$0x7]   ;;  %v25_v5 = vld [vmem:[#allocation0] sm:$0x7]  }
   0xa   :  { %v16_v3 = vld [vmem:[#allocation0 + $0x8] sm:$0x7]   ;;  %32 = vst.msk [vmem:[%s63_s1 + $0x3] sm:$0x7] %vm17_vm0, %v20_v4   ;;  %33 = vst.msk [vmem:[%s63_s1 + $0x6] sm:$0x7] %vm17_vm0, %v25_v5  }
   0xb   :  { %18 = vst.msk [vmem:[%s63_s1] sm:$0x7] %vm17_vm0, %v16_v3  }

// kernel: branch_separables_reduction.2
= control target key start
LH: loop header
LB: loop body
LE: loop exit
PB: predicated region body
PF: predicated region fallthrough
CT: control target
= control target key end

     0   :  { %s1730_s0 = inlined_call_operand.vmem [shape: f32[4,8,256], index: 0, kind: input, shape index: {}]   ;;  %s1731_s1 = inlined_call_operand.vmem [shape: f32[9,8,128], index: 1, kind: input, shape index: {}]   ;;  %s1732_s2 = inlined_call_operand.<no memory space> [shape: f32[], index: 2, kind: input, shape index: {}]   ;;  %s1733_s3 = inlined_call_operand.vmem [shape: f32[9,8,128], index: 3, kind: input, shape index: {}]   ;;  %s1734_s4 = inlined_call_operand.vmem [shape: f32[16,1], index: 4, kind: input, shape index: {}]   ;;  %s1735_s5 = inlined_call_operand.vmem [shape: f32[16,8], index: 5, kind: input, shape index: {}]   ;;  %s1736_s6 = inlined_call_operand.vmem [shape: f32[8,1], index: 6, kind: input, shape index: {}]   ;;  %s1737_s7 = inlined_call_operand.vmem [shape: f32[8,8], index: 7, kind: input, shape index: {}]   ;;  %s1738_s8 = inlined_call_operand.vmem [shape: f32[16,256], index: 8, kind: output, shape index: {}]  }
   0x1   :  { %v1418_v0 = vstv %s1732_s2 }
   0x2   :  { %s1420_s29 = smov 0   ;;  %s1422_s30 = smov 0  }
   0x3   :  { %s1424_s9 = smov 0  }
   0x4 LB: > { %s1219_s2 = sadd.s32 4294967295, %s1351_s9   ;;  %s1437_s10 = sadd.s32 1, %s1351_s9   ;;  %s1351_s9 = sphi %s1424_s9, %s1742_s9   ;;  %s1347_s30 = sphi %s1422_s30, %s1741_s30   ;;  %s1343_s29 = sphi %s1420_s29, %s1740_s29  }
   0x5   : > { %s28_s11 = ssub.s32 %s1351_s9, %s1437_s10  ;;  %s31_s12 = sadd.s32 1, %s1347_s30 }
   0x6   : > { %p29_p0 = scmp.eq.s32.totalorder %s28_s11, 0  ;;  %p38_p1 = scmp.ne.s32.totalorder %s1347_s30, %s1343_s29 }
   0x7   : > { %p39_p2 = scmp.eq.s32.totalorder %s1351_s9, 0  ;;  %p208_p3 = scmp.eq.s32.totalorder %s1219_s2, 1 }
   0x8   : > { %s1448_s13 = scalar_select %p29_p0, %s1347_s30, %s31_s12  }
   0x9   : > { %p40_p4 = por %p39_p2, %p38_p1  ;;  %p1450_p5 = por %p208_p3, %p38_p1 }
   0xa   : > { %p1226_p6 = scmp.ge.s32.totalorder %s1351_s9, 2 }
   0xc   : > { %271 = sbr.rel (%p1226_p6) target bundleno = 23 (0x17), region = 40 }
  0x11   : > { %274 = sbr.rel (!%p40_p4) target bundleno = 23 (0x17), region = 44  ;;  %s276_s15 = sand.u32 (%p40_p4), 1, %s1347_s30  }
  0x12   : > { %s1228_s16 = sshll.u32 (%p40_p4), %s1351_s9, 3  ;;  %s1227_s17 = sshll.u32 (%p40_p4), %s276_s15, 5 }
  0x13   : > { %s280_s20 = scalar_lea.vmem (%p40_p4), %s1730_s0, %s1228_s16  ;;  %s278_s21 = scalar_lea.vmem (%p40_p4), [#allocation32], %s1227_s17 }
  0x14   : > { %v315_v1 = vld [vmem:[%s280_s20] sm:$0xff] (%p40_p4)  ;;  %v317_v2 = vld [vmem:[%s280_s20 + $0x10] sm:$0xff] (%p40_p4) }
  0x15   : > { %v319_v3 = vld [vmem:[%s280_s20 + $0x20] sm:$0xff] (%p40_p4)  ;;  %316 = vst [vmem:[%s278_s21] sm:$0xff] (%p40_p4), %v315_v1  ;;  %318 = vst [vmem:[%s278_s21 + $0x8] sm:$0xff] (%p40_p4), %v317_v2  ;;  %v321_v4 = vld [vmem:[%s280_s20 + $0x30] sm:$0xff] (%p40_p4) }
  0x16   : > { %320 = vst [vmem:[%s278_s21 + $0x10] sm:$0xff] %v319_v3  ;;  %322 = vst [vmem:[%s278_s21 + $0x18] sm:$0xff] %v321_v4 }
  0x17 PF: > { %p1229_p7 = scmp.ge.s32.totalorder %s1351_s9, 1  ;;  %p327_p8 = scmp.lt.s32.totalorder %s1351_s9, 3 }
  0x19   : > { %p328_p9 = pnand %p1229_p7, %p327_p8 }
  0x1a   : > { %s334_s22 = sand.u32 (!%p328_p9), 1, %s1343_s29   ;;  %s1355_s27 = smov (!%p328_p9), 127  }
  0x1b   : > { %331 = sbr.rel (%p328_p9) target bundleno = 519 (0x207), region = 82  ;;  %s1230_s23 = sshll.u32 (!%p328_p9), %s334_s22, 5 }
  0x1c   : > { %s1470_s24 = scalar_lea.vmem (!%p328_p9), [#allocation32], %s1230_s23  ;;  %s1356_s28 = smov (!%p328_p9), 8  }
  0x1d   : > { %s1357_s11 = smov (!%p328_p9), 120   ;;  %s1358_s12 = smov (!%p328_p9), 119  }
  0x1e   : > { %s1366_s21 = smov (!%p328_p9), 9   ;;  %s1367_s23 = smov (!%p328_p9), 7  }
  0x1f   : > { %s1231_s26 = sshll.u32 (!%p328_p9), %s334_s22, 4 }
  0x20   : > { %v595_v5 = vlaneseq  ;;  %v1353_v6 = vmov 1   ;;  %v1354_v8 = vmov 0   ;;  %v1257_v9 = vld [vmem:[%s1470_s24 + $0x10] sm:$0xff]  ;;  %v594_v10 = vld [vmem:[%s1736_s6] sm:$0xff]  ;;  %v1256_v17 = vld [vmem:[%s1470_s24 + $0x8] sm:$0xff]  ;;  %v1359_v50 = vmov 2  }
  0x21   : > { %1305 = vset.pattern.permute.xlu1 %v1353_v6  ;;  %1304 = vset.pattern.permute.xlu0 %v1354_v8  ;;  %v717_v12 = vmax.f32 %v1257_v9, 0.0  ;;  %v710_v13 = vld [vmem:[%s1470_s24] sm:$0xff]  ;;  %v714_v18 = vmax.f32 %v1256_v17, 0.0  ;;  %v1232_v19 = vld [vmem:[%s1733_s3 + $0x8] sm:$0xff]  ;;  %v1234_v33 = vld [vmem:[%s1733_s3 + $0x18] sm:$0xff]  ;;  %v1360_v51 = vmov 3  }
  0x22   : > { %v1467_v7 = vand.u32 127, %v595_v5  ;;  %v711_v16 = vmax.f32 %v710_v13, 0.0  ;;  %v1251_v20 = vld [vmem:[%s1734_s4] sm:$0xff]  ;;  %v1254_v21 = vld [vmem:[%s1734_s4 + $0x8] sm:$0xff]  ;;  %v417_v22 = vmax.f32 %v1232_v19, %v1418_v0  ;;  %v1233_v35 = vld [vmem:[%s1733_s3 + $0x10] sm:$0xff]  ;;  %v439_v39 = vmax.f32 %v1234_v33, %v1418_v0  ;;  %s380_s15 = scalar_lea.vmem [#allocation33], %s1231_s26 }
  0x23   : > { %742 = vrot.lane.b32.xlu1 %v717_v12, %s1355_s27  ;;  %v404_v27 = vld [vmem:[%s1733_s3] sm:$0xff]  ;;  %v1258_v38 = vld [vmem:[%s1470_s24 + $0x18] sm:$0xff]  ;;  %v428_v41 = vmax.f32 %v1233_v35, %v1418_v0  ;;  %v1361_v54 = vmov 4   ;;  %v1362_v55 = vmov 6   ;;  %v1363_v56 = vmov 5   ;;  %v1236_v59 = vld [vmem:[%s1733_s3 + $0x28] sm:$0xff] }
  0x24   : > { %v597_v11 = vadd.s32 128, %v1467_v7  ;;  %vm602_vm0 = vcmp.lt.s32.totalorder %v1467_v7, 120  ;;  %v726_v28 = vmul.f32 %v714_v18, %v417_v22  ;;  %v407_v29 = vmax.f32 %v404_v27, %v1418_v0  ;;  %v606_v32 = vld [vmem:[%s1737_s7] sm:$0xff]  ;;  %v1237_v62 = vld [vmem:[%s1733_s3 + $0x30] sm:$0xff]  ;;  %v1238_v3 = vld [vmem:[%s1733_s3 + $0x38] sm:$0xff]  ;;  %s1260_s16 = sshll.u32 (%p1450_p5), %s1219_s2, 3 }
  0x25   : > { %vm610_vm2 = vcmp.lt.s32.totalorder %v1467_v7, 8  ;;  %v1235_v37 = vld [vmem:[%s1733_s3 + $0x20] sm:$0xff]  ;;  %v720_v44 = vmax.f32 %v1258_v38, 0.0  ;;  %v736_v46 = vmul.f32 %v717_v12, %v439_v39  ;;  %v1364_v57 = vmov 7   ;;  %s1055_s17 = scalar_lea.vmem (%p1450_p5), %s1738_s8, %s1260_s16 }
  0x26   : > { %vm598_vm1 = vcmp.lt.s32.totalorder %v597_v11, 129  ;;  %v722_v30 = vmul.f32 %v711_v16, %v407_v29  ;;  %v611_v34 = vsel %vm610_vm2, %v606_v32, %v1418_v0  ;;  %v450_v43 = vmax.f32 %v1235_v37, %v1418_v0  ;;  %v1239_v11 = vld [vmem:[%s1733_s3 + $0x40] sm:$0xff] }
  0x27   : > { %v599_v14 = vsel %vm598_vm1, %v594_v10, %v1418_v0  ;;  %748 = vrot.lane.b32.xlu1 %v711_v16, %s1357_s11  ;;  %v637_v23 = vsel %vm598_vm1, %v1251_v20, %v1418_v0  ;;  %v677_v24 = vsel %vm598_vm1, %v1254_v21, %v1418_v0  ;;  %v1365_v58 = vmov 8  }
  0x28   : > { %v603_v15 = vsel %vm602_vm0, %v599_v14, %v1418_v0  ;;  %v641_v25 = vsel %vm602_vm0, %v637_v23, %v1418_v0  ;;  %v681_v26 = vsel %vm602_vm0, %v677_v24, %v1418_v0  ;;  %v727_v31 = vadd.f32 %v726_v28, %v722_v30 }
  0x29   : > { %604 = vrot.lane.b32.xlu0 %v603_v15, %s1356_s28  ;;  %v740_v49 = vmul.f32 %v720_v44, %v450_v43  ;;  %v461_v61 = vmax.f32 %v1236_v59, %v1418_v0  ;;  %v472_v1 = vmax.f32 %v1237_v62, %v1418_v0  ;;  %v483_v9 = vmax.f32 %v1238_v3, %v1418_v0 }
  0x2a   : > { %v494_v14 = vmax.f32 %v1239_v11, %v1418_v0 }
  0x2b   : > { %760 = vrot.lane.b32.xlu1 %v711_v16, %s1358_s12 }
  0x2d   : > { %728 = vrot.lane.b32.xlu0 %v711_v16, %s1355_s27  ;;  %v1564_v16 = vshrl.u32 %v595_v5, 7 }
  0x2f   : > { %v783_v22 = vsub.s32 1, %v1564_v16  ;;  %v773_v23 = vsub.s32 0, %v1564_v16  ;;  %v793_v24 = vsub.s32 2, %v1564_v16  ;;  %v803_v35 = vsub.s32 3, %v1564_v16 }
  0x30   : > { %v813_v38 = vsub.s32 4, %v1564_v16  ;;  %v833_v59 = vsub.s32 6, %v1564_v16  ;;  %v843_v62 = vsub.s32 7, %v1564_v16 }
  0x31   : > { %754 = vrot.lane.b32.xlu0 %v714_v18, %s1357_s11 }
  0x95   : > { %v743_v60 = vpop.permute.xlu1 %742 }
  0x96   : > { %v746_v63 = vmul.f32 %v743_v60, %v461_v61 }
  0x99   : > { %v749_v2 = vpop.permute.xlu1 %748 }
  0x9b   : > { %v605_v36 = vpop.permute.xlu0 %604 }
  0x9c   : > { %v614_v40 = vmax.f32 %v611_v34, %v605_v36 }
  0x9d   : > { %v761_v15 = vpop.permute.xlu1 %760 }
  0x9e   : > { %v622_v42 = vmax.f32 %v614_v40, %v1418_v0  ;;  %v764_v18 = vmul.f32 %v761_v15, %v494_v14 }
  0x9f   : > { %v729_v45 = vpop.permute.xlu0 %728 }
  0xa0   : > { %778 = vperm.xlu1 %1305, %v622_v42   ;;  %768 = vperm.xlu0 %1304, %v622_v42   ;;  %v732_v47 = vmul.f32 %v729_v45, %v428_v41 }
  0xa2   : > { %v733_v48 = vadd.f32 %v732_v47, %v727_v31  ;;  %v1253_v31 = vld [vmem:[%s1735_s5] sm:$0xff] }
  0xa3   : > { %v755_v10 = vpop.permute.xlu0 %754  ;;  %v650_v36 = vsel %vm610_vm2, %v1253_v31, %v1418_v0  ;;  %v1245_v31 = vld [vmem:[%s1731_s1 + $0x20] sm:$0xff] }
  0xa4   : > { %1306 = vset.pattern.permute.xlu1 %v1359_v50  ;;  %1307 = vset.pattern.permute.xlu0 %v1360_v51  ;;  %v737_v52 = vadd.f32 %v736_v46, %v733_v48  ;;  %v758_v13 = vmul.f32 %v755_v10, %v483_v9 }
  0xa5   : > { %788 = vperm.xlu1 %1306, %v622_v42   ;;  %798 = vperm.xlu0 %1307, %v622_v42  }
  0xa6   : > { %v741_v53 = vadd.f32 %v740_v49, %v737_v52 }
  0xa8   : > { %v747_v4 = vadd.f32 %v746_v63, %v741_v53  ;;  %v1255_v63 = vld [vmem:[%s1735_s5 + $0x8] sm:$0xff] }
  0xa9   : > { %1308 = vset.pattern.permute.xlu1 %v1361_v54  ;;  %1310 = vset.pattern.permute.xlu0 %v1362_v55  ;;  %v690_v9 = vsel %vm610_vm2, %v1255_v63, %v1418_v0 }
  0xaa   : > { %808 = vperm.xlu1 %1308, %v622_v42   ;;  %828 = vperm.xlu0 %1310, %v622_v42  }
  0xae   : > { %1309 = vset.pattern.permute.xlu1 %v1363_v56  ;;  %642 = vrot.lane.b32.xlu0 %v641_v25, %s1356_s28 }
  0xaf   : > { %818 = vperm.xlu1 %1309, %v622_v42   ;;  %1313 = vset.pattern.permute.xlu0 %v1354_v8 }
  0xb3   : > { %1311 = vset.pattern.permute.xlu1 %v1364_v57 }
  0xb4   : > { %838 = vperm.xlu1 %1311, %v622_v42  }
  0xb8   : > { %1312 = vset.pattern.permute.xlu1 %v1365_v58 }
  0xb9   : > { %848 = vperm.xlu1 %1312, %v622_v42   ;;  %v823_v42 = vsub.s32 5, %v1564_v16 }
  0xbd   : > { %682 = vrot.lane.b32.xlu1 %v681_v26, %s1356_s28 }
  0xbe   : > { %1314 = vset.pattern.permute.xlu1 %v1354_v8  ;;  %v752_v8 = vmul.f32 %v749_v2, %v472_v1 }
  0xc0   : > { %v753_v12 = vadd.f32 %v752_v8, %v747_v4 }
  0xc2   : > { %v759_v17 = vadd.f32 %v758_v13, %v753_v12 }
  0xc4   : > { %v765_v21 = vadd.f32 %v764_v18, %v759_v17 }
  0xc6   : > { %v784_v27 = vrot.slane %v765_v21, %v783_v22  ;;  %v774_v5 = vrot.slane %v765_v21, %v773_v23  ;;  %v794_v30 = vrot.slane %v765_v21, %v793_v24  ;;  %v804_v41 = vrot.slane %v765_v21, %v803_v35 }
  0xc7   : > { %v814_v46 = vrot.slane %v765_v21, %v813_v38  ;;  %v824_v52 = vrot.slane %v765_v21, %v823_v42  ;;  %v834_v1 = vrot.slane %v765_v21, %v833_v59  ;;  %v844_v8 = vrot.slane %v765_v21, %v843_v62  ;;  %v1243_v21 = vld [vmem:[%s1731_s1 + $0x10] sm:$0xff] }
 0x11b   : > { %v779_v19 = vpop.permute.xlu1 %778  ;;  %v769_v20 = vpop.permute.xlu0 %768 }
 0x11c   : > { %v785_v28 = vmul.f32 %v784_v27, %v779_v19  ;;  %v775_v29 = vmul.f32 %v774_v5, %v769_v20  ;;  %v1242_v20 = vld [vmem:[%s1731_s1 + $0x8] sm:$0xff]  ;;  %v1244_v5 = vld [vmem:[%s1731_s1 + $0x18] sm:$0xff] }
 0x11d   : > { %v514_v27 = vmax.f32 %v1418_v0, %v1242_v20 }
 0x11e   : > { %v786_v37 = vadd.f32 %v785_v28, %v775_v29  ;;  %v524_v28 = vmax.f32 %v1418_v0, %v1243_v21 }
 0x120   : > { %v789_v25 = vpop.permute.xlu1 %788  ;;  %v799_v26 = vpop.permute.xlu0 %798 }
 0x121   : > { %v795_v34 = vmul.f32 %v794_v30, %v789_v25  ;;  %v805_v45 = vmul.f32 %v804_v41, %v799_v26 }
 0x123   : > { %v796_v40 = vadd.f32 %v795_v34, %v786_v37  ;;  %v534_v34 = vmax.f32 %v1418_v0, %v1244_v5 }
 0x125   : > { %v809_v32 = vpop.permute.xlu1 %808  ;;  %v829_v33 = vpop.permute.xlu0 %828  ;;  %v806_v48 = vadd.f32 %v805_v45, %v796_v40  ;;  %v544_v40 = vmax.f32 %v1418_v0, %v1245_v31 }
 0x126   : > { %v815_v49 = vmul.f32 %v814_v46, %v809_v32  ;;  %v835_v4 = vmul.f32 %v834_v1, %v829_v33  ;;  %v1249_v1 = vld [vmem:[%s1731_s1 + $0x40] sm:$0xff] }
 0x128   : > { %v816_v61 = vadd.f32 %v815_v49, %v806_v48 }
 0x129   : > { %v643_v39 = vpop.permute.xlu0 %642 }
 0x12a   : > { %v819_v43 = vpop.permute.xlu1 %818  ;;  %v657_v44 = vmax.f32 %v650_v36, %v643_v39  ;;  %v1246_v36 = vld [vmem:[%s1731_s1 + $0x28] sm:$0xff] }
 0x12b   : > { %v825_v60 = vmul.f32 %v824_v52, %v819_v43  ;;  %v1247_v43 = vld [vmem:[%s1731_s1 + $0x30] sm:$0xff] }
 0x12c   : > { %v1589_v47 = vmax.f32 %v1418_v0, %v657_v44  ;;  %v554_v44 = vmax.f32 %v1418_v0, %v1246_v36  ;;  %v564_v52 = vmax.f32 %v1418_v0, %v1247_v43 }
 0x12d   : > { %v826_v2 = vadd.f32 %v825_v60, %v816_v61 }
 0x12e   : > { %907 = vperm.xlu0 %1313, %v1589_v47  }
 0x12f   : > { %v839_v53 = vpop.permute.xlu1 %838  ;;  %v836_v11 = vadd.f32 %v835_v4, %v826_v2 }
 0x130   : > { %v845_v10 = vmul.f32 %v844_v8, %v839_v53  ;;  %v1248_v53 = vld [vmem:[%s1731_s1 + $0x38] sm:$0xff] }
 0x131   : > { %v574_v2 = vmax.f32 %v1418_v0, %v1248_v53 }
 0x132   : > { %1316 = vset.pattern.permute.xlu0 %v1353_v6  ;;  %v846_v15 = vadd.f32 %v845_v10, %v836_v11  ;;  %v584_v11 = vmax.f32 %v1418_v0, %v1249_v1 }
 0x134   : > { %v849_v3 = vpop.permute.xlu1 %848 }
 0x135   : > { %v851_v17 = vadd.f32 %v849_v3, %v846_v15 }
 0x137   : > { %v1612_v7 = vmax.f32 %v851_v17, 0.0 }
 0x138   : > { %v683_v12 = vpop.permute.xlu1 %682 }
 0x139   : > { %v697_v13 = vmax.f32 %v690_v9, %v683_v12  ;;  %v879_v49 = vmul.f32 %v1612_v7, %v544_v40 }
 0x13b   : > { %v701_v14 = vmax.f32 %v1418_v0, %v697_v13 }
 0x13d   : > { %912 = vperm.xlu1 %1314, %v701_v14   ;;  %928 = vperm.xlu0 %1316, %v701_v14  }
 0x141   : > { %1315 = vset.pattern.permute.xlu1 %v1353_v6  ;;  %1318 = vset.pattern.permute.xlu0 %v1360_v51 }
 0x142   : > { %924 = vperm.xlu1 %1315, %v1589_v47   ;;  %956 = vperm.xlu0 %1318, %v1589_v47  }
 0x146   : > { %1317 = vset.pattern.permute.xlu1 %v1359_v50  ;;  %853 = vrot.lane.b32.xlu0 %v1612_v7, %s1366_s21 }
 0x147   : > { %940 = vperm.xlu1 %1317, %v1589_v47   ;;  %1321 = vset.pattern.permute.xlu0 %v1361_v54 }
 0x14a   : > { %865 = vrot.lane.b32.xlu0 %v1612_v7, %s1367_s23 }
 0x14b   : > { %944 = vperm.xlu1 %1317, %v701_v14  }
 0x14e   : > { %881 = vrot.lane.b32.xlu0 %v1612_v7, %s1355_s27  ;;  %s1368_s27 = smov 1  }
 0x14f   : > { %1319 = vset.pattern.permute.xlu1 %v1360_v51 }
 0x150   : > { %960 = vperm.xlu1 %1319, %v701_v14  }
 0x152   : > { %893 = vrot.lane.b32.xlu0 %v1612_v7, %s1357_s11  ;;  %s1369_s11 = smov 121  }
 0x154   : > { %1320 = vset.pattern.permute.xlu1 %v1361_v54 }
 0x155   : > { %972 = vperm.xlu1 %1320, %v1589_v47  }
 0x156   : > { %976 = vperm.xlu0 %1321, %v701_v14  }
 0x159   : > { %859 = vrot.lane.b32.xlu1 %v1612_v7, %s1356_s28 }
 0x15a   : > { %1323 = vset.pattern.permute.xlu0 %v1362_v55  ;;  %1322 = vset.pattern.permute.xlu1 %v1363_v56 }
 0x15b   : > { %1004 = vperm.xlu0 %1323, %v1589_v47  }
 0x15d   : > { %871 = vrot.lane.b32.xlu1 %v1612_v7, %s1368_s27 }
 0x15f   : > { %1326 = vset.pattern.permute.xlu0 %v1364_v57 }
 0x160   : > { %1024 = vperm.xlu0 %1326, %v701_v14  }
 0x161   : > { %887 = vrot.lane.b32.xlu1 %v1612_v7, %s1369_s11 }
 0x164   : > { %1328 = vset.pattern.permute.xlu0 %v1365_v58 }
 0x165   : > { %988 = vperm.xlu1 %1322, %v1589_v47  }
 0x169   : > { %899 = vrot.lane.b32.xlu1 %v1612_v7, %s1358_s12 }
 0x16d   : > { %992 = vperm.xlu1 %1322, %v701_v14  }
 0x171   : > { %1324 = vset.pattern.permute.xlu1 %v1362_v55 }
 0x172   : > { %1008 = vperm.xlu1 %1324, %v701_v14  }
 0x176   : > { %1325 = vset.pattern.permute.xlu1 %v1364_v57  ;;  %v1241_v57 = vld [vmem:[%s1731_s1] sm:$0xff] }
 0x177   : > { %1020 = vperm.xlu1 %1325, %v1589_v47   ;;  %v504_v26 = vmax.f32 %v1418_v0, %v1241_v57 }
 0x17b   : > { %1327 = vset.pattern.permute.xlu1 %v1365_v58 }
 0x17c   : > { %1036 = vperm.xlu1 %1327, %v1589_v47  }
 0x180   : > { %1040 = vperm.xlu1 %1327, %v701_v14  }
 0x1a9   : > { %v1643_v50 = vpop.permute.xlu0 %907 }
 0x1b8   : > { %v913_v6 = vpop.permute.xlu1 %912  ;;  %v929_v54 = vpop.permute.xlu0 %928 }
 0x1bd   : > { %v1645_v51 = vpop.permute.xlu1 %924  ;;  %v1649_v55 = vpop.permute.xlu0 %956 }
 0x1c1   : > { %v854_v58 = vpop.permute.xlu0 %853 }
 0x1c2   : > { %v1647_v56 = vpop.permute.xlu1 %940  ;;  %v857_v32 = vmul.f32 %v854_v58, %v504_v26 }
 0x1c5   : > { %v866_v29 = vpop.permute.xlu0 %865 }
 0x1c6   : > { %v945_v18 = vpop.permute.xlu1 %944  ;;  %v869_v37 = vmul.f32 %v866_v29, %v524_v28 }
 0x1c9   : > { %v882_v47 = vpop.permute.xlu0 %881 }
 0x1ca   : > { %v885_v61 = vmul.f32 %v882_v47, %v554_v44 }
 0x1cb   : > { %v961_v19 = vpop.permute.xlu1 %960 }
 0x1cd   : > { %v894_v8 = vpop.permute.xlu0 %893 }
 0x1ce   : > { %v897_v12 = vmul.f32 %v894_v8, %v574_v2 }
 0x1d0   : > { %v1660_v25 = vpop.permute.xlu1 %972 }
 0x1d1   : > { %v977_v21 = vpop.permute.xlu0 %976 }
 0x1d4   : > { %v860_v30 = vpop.permute.xlu1 %859 }
 0x1d5   : > { %v863_v33 = vmul.f32 %v860_v30, %v514_v27 }
 0x1d7   : > { %v864_v39 = vadd.f32 %v863_v33, %v857_v32 }
 0x1d8   : > { %v872_v41 = vpop.permute.xlu1 %871 }
 0x1d9   : > { %v870_v45 = vadd.f32 %v869_v37, %v864_v39  ;;  %v875_v46 = vmul.f32 %v872_v41, %v534_v34  ;;  %v1005_v34 = vpop.permute.xlu0 %1004 }
 0x1db   : > { %v876_v48 = vadd.f32 %v875_v46, %v870_v45 }
 0x1dc   : > { %v888_v60 = vpop.permute.xlu1 %887 }
 0x1dd   : > { %v880_v63 = vadd.f32 %v879_v49, %v876_v48  ;;  %v891_v4 = vmul.f32 %v888_v60, %v564_v52  ;;  %v1025_v45 = vpop.permute.xlu0 %1024 }
 0x1df   : > { %v886_v3 = vadd.f32 %v885_v61, %v880_v63 }
 0x1e0   : > { %v989_v9 = vpop.permute.xlu1 %988 }
 0x1e1   : > { %v892_v10 = vadd.f32 %v891_v4, %v886_v3 }
 0x1e3   : > { %v898_v14 = vadd.f32 %v897_v12, %v892_v10 }
 0x1e4   : > { %v900_v13 = vpop.permute.xlu1 %899 }
 0x1e5   : > { %v903_v15 = vmul.f32 %v900_v13, %v584_v11 }
 0x1e7   : > { %v904_v17 = vadd.f32 %v903_v15, %v898_v14 }
 0x1e8   : > { %v993_v7 = vpop.permute.xlu1 %992 }
 0x1e9   : > { %v918_v57 = vrot.slane %v904_v17, %v773_v23  ;;  %v934_v58 = vrot.slane %v904_v17, %v783_v22  ;;  %v950_v20 = vrot.slane %v904_v17, %v793_v24  ;;  %v966_v5 = vrot.slane %v904_v17, %v803_v35 }
 0x1ea   : > { %v982_v28 = vrot.slane %v904_v17, %v813_v38  ;;  %v998_v22 = vrot.slane %v904_v17, %v823_v42 }
 0x1eb   : > { %v920_v26 = vmul.f32 %v918_v57, %v913_v6  ;;  %v936_v27 = vmul.f32 %v934_v58, %v929_v54  ;;  %v952_v30 = vmul.f32 %v950_v20, %v945_v18  ;;  %v919_v23 = vmul.f32 %v918_v57, %v1643_v50 }
 0x1ec   : > { %v935_v32 = vmul.f32 %v934_v58, %v1645_v51  ;;  %v968_v33 = vmul.f32 %v966_v5, %v961_v19  ;;  %v951_v54 = vmul.f32 %v950_v20, %v1647_v56  ;;  %v984_v36 = vmul.f32 %v982_v28, %v977_v21 }
 0x1ed   : > { %v938_v29 = vadd.f32 %v936_v27, %v920_v26  ;;  %v1009_v31 = vpop.permute.xlu1 %1008  ;;  %v967_v38 = vmul.f32 %v966_v5, %v1649_v55  ;;  %v1014_v18 = vrot.slane %v904_v17, %v833_v59  ;;  %v1030_v51 = vrot.slane %v904_v17, %v843_v62 }
 0x1ee   : > { %v937_v6 = vadd.f32 %v935_v32, %v919_v23  ;;  %v1000_v39 = vmul.f32 %v998_v22, %v993_v7  ;;  %v983_v40 = vmul.f32 %v982_v28, %v1660_v25  ;;  %v999_v56 = vmul.f32 %v998_v22, %v989_v9 }
 0x1ef   : > { %v954_v24 = vadd.f32 %v952_v30, %v938_v29  ;;  %v1016_v43 = vmul.f32 %v1014_v18, %v1009_v31  ;;  %v1015_v46 = vmul.f32 %v1014_v18, %v1005_v34  ;;  %v1032_v59 = vmul.f32 %v1030_v51, %v1025_v45 }
 0x1f0   : > { %v953_v37 = vadd.f32 %v951_v54, %v937_v6 }
 0x1f1   : > { %v970_v35 = vadd.f32 %v968_v33, %v954_v24 }
 0x1f2   : > { %v1021_v50 = vpop.permute.xlu1 %1020  ;;  %v969_v19 = vadd.f32 %v967_v38, %v953_v37 }
 0x1f3   : > { %v986_v42 = vadd.f32 %v984_v36, %v970_v35  ;;  %v1031_v16 = vmul.f32 %v1030_v51, %v1021_v50 }
 0x1f4   : > { %v985_v44 = vadd.f32 %v983_v40, %v969_v19 }
 0x1f5   : > { %v1002_v41 = vadd.f32 %v1000_v39, %v986_v42 }
 0x1f6   : > { %v1001_v48 = vadd.f32 %v999_v56, %v985_v44 }
 0x1f7   : > { %v1018_v55 = vadd.f32 %v1016_v43, %v1002_v41  ;;  %v1037_v47 = vpop.permute.xlu1 %1036 }
 0x1f8   : > { %v1017_v49 = vadd.f32 %v1015_v46, %v1001_v48 }
 0x1f9   : > { %v1034_v62 = vadd.f32 %v1032_v59, %v1018_v55 }
 0x1fa   : > { %v1033_v52 = vadd.f32 %v1031_v16, %v1017_v49  ;;  %1053 = sbr.rel (!%p1450_p5) target bundleno = 519 (0x207), region = 90 }
 0x1fb   : > { %v1041_v53 = vpop.permute.xlu1 %1040 }
 0x1fc   : > { %v1044_v60 = vadd.f32 %v1041_v53, %v1034_v62  ;;  %v1043_v61 = vadd.f32 %v1037_v47, %v1033_v52 }
 0x1fe   : > { %1046 = vst [vmem:[%s380_s15 + $0x8] sm:$0xff] %v1044_v60  ;;  %1045 = vst [vmem:[%s380_s15] sm:$0xff] %v1043_v61 }
 0x205   : > { %v1086_v25 = vld [vmem:[%s380_s15] sm:$0xff]  ;;  %v1088_v63 = vld [vmem:[%s380_s15 + $0x8] sm:$0xff] }
 0x206   : > { %1087 = vst [vmem:[%s1055_s17] sm:$0xff] %v1086_v25  ;;  %1089 = vst [vmem:[%s1055_s17 + $0x10] sm:$0xff] %v1088_v63 }
 0x207 PF: > { %p21_p10 = scmp.ge.s32.totalorder %s1437_s10, 4   ;;  %s1740_s29 = smov %s1347_s30 }
 0x208   : > { %s1741_s30 = smov %s1448_s13  ;;  %s1742_s9 = smov %s1437_s10 }
 0x209   :  { %23 = sbr.rel (!%p21_p10) target bundleno = 4 (0x4), region = 241 }

</bundles_post_ra>
